<compile_context>
chip_gen: v5e
topology: v5e:2x2
jax: 0.10.0
libtpu: 0.0.40
codegen_flags: <defaults>
</compile_context>

<pallas_src>
import functools

import jax
import jax.numpy as jnp
from jax import lax
from jax.experimental import pallas as pl
from jax.experimental.pallas import tpu as pltpu


# ----------------------------------------------------------------------------
# Pallas kernel
# ----------------------------------------------------------------------------
def _afno_block_kernel(x_ref, w1_ref, w2_ref, b1_ref, b2_ref, o_ref, *,
                       sparsity, nb_tile):
    """One grid step == one (block-group, batch, token-tile) of the complex MLP.

    Shapes inside the kernel (batch dim squeezed):
      x_ref, o_ref : (nb_tile, 2bs, TN) bf16  -- real rows over imag rows,
                                                 tokens on the lanes
      w*_ref       : (nb_tile, 2bs, 2bs) bf16 -- stacked complex weights (w^T)
      b*_ref       : (nb_tile, 2bs, 1)  f32
    """
    lam = jnp.float32(sparsity)

    def body(j, carry):
        x = x_ref[j]                                           # (2bs, TN) bf16
        # Layer 1: single stacked complex matmul (f32 accumulation) + bias+ReLU.
        y1 = jnp.dot(w1_ref[j], x, preferred_element_type=jnp.float32)
        y1 = jnp.maximum(y1 + b1_ref[j], 0.0)
        # Layer 2.
        y2 = jnp.dot(w2_ref[j], y1.astype(x.dtype),
                     preferred_element_type=jnp.float32)
        y2 = y2 + b2_ref[j]
        # The module applies ReLU then softshrink(lam); for lam > 0 that is
        # exactly relu(y2 - lam)  (ReLU output >= 0, softshrink is identity-lam
        # above lam and 0 in [0, lam]).
        o_ref[j] = jnp.maximum(y2 - lam, 0.0).astype(o_ref.dtype)
        return carry

    lax.fori_loop(0, nb_tile, body, None)


# ----------------------------------------------------------------------------
# Pallas call wrapper
# ----------------------------------------------------------------------------
def afno_spectral_mix(xs, w1s, w2s, b1s, b2s, sparsity, nb_tile, tn,
                      vmem_limit):
    """xs: (b, nb, 2bs, S_pad) bf16; w*s: (nb, 2bs, 2bs) bf16; b*: (nb,2bs,1) f32."""
    bsz, nb, bs2, s_pad = xs.shape
    assert nb % nb_tile == 0 and s_pad % tn == 0 and tn % 128 == 0
    g = nb // nb_tile
    n_tiles = s_pad // tn

    # Grid ordering: block-groups outermost (weight reuse) when that axis splits
    # evenly across megacore TCs; otherwise put the (large) token axis outermost
    # so v7x's 2 TensorCores stay balanced. Weights are KB-scale -> re-DMA is
    # negligible either way.
    if g % 2 == 0 or g >= n_tiles:
        grid = (g, bsz, n_tiles)
        x_map = lambda gi, bi, ni: (bi, gi, 0, ni)
        w_map = lambda gi, bi, ni: (gi, 0, 0)
    else:
        grid = (n_tiles, bsz, g)
        x_map = lambda ni, bi, gi: (bi, gi, 0, ni)
        w_map = lambda ni, bi, gi: (gi, 0, 0)

    # Last two block dims are (2bs, TN) / (2bs, 2bs) / (2bs, 1): all either a
    # multiple of 128 or equal to the full array dim -> (8,128)-legal,
    # lane-dense stores.
    x_spec = pl.BlockSpec((None, nb_tile, bs2, tn), x_map)
    w_spec = pl.BlockSpec((nb_tile, bs2, bs2), w_map)
    b_spec = pl.BlockSpec((nb_tile, bs2, 1), w_map)

    kernel = functools.partial(_afno_block_kernel, sparsity=sparsity,
                               nb_tile=nb_tile)

    # 2 stacked matmuls of (2bs,2bs)@(2bs,TN) per block per token.
    flops = int(4 * bs2 * bs2 * nb * bsz * s_pad)
    bytes_accessed = int(2 * xs.size * 2 + (w1s.size + w2s.size) * 2 +
                         (b1s.size + b2s.size) * 4)

    return pl.pallas_call(
        kernel,
        grid=grid,
        in_specs=[x_spec, w_spec, w_spec, b_spec, b_spec],
        out_specs=x_spec,
        out_shape=jax.ShapeDtypeStruct(xs.shape, jnp.bfloat16),
        compiler_params=pltpu.CompilerParams(
            # No reduction axis -> fully parallel (megacore-shardable).
            dimension_semantics=("parallel", "parallel", "parallel"),
            vmem_limit_bytes=int(vmem_limit)),
        cost_estimate=pl.CostEstimate(
            flops=flops, transcendentals=0, bytes_accessed=bytes_accessed),
    )(xs, w1s, w2s, b1s, b2s)


# ----------------------------------------------------------------------------
# Helpers
# ----------------------------------------------------------------------------
def _round_up(v, m):
    return (v + m - 1) // m * m


def _vmem_budget_bytes():
    """Per-generation scoped-VMEM budget: 75% of physical, capped at 96 MiB
    (96 MiB on v5e/v6e's 128 MiB, 48 MiB on v7x's 64 MiB); 48 MiB fallback."""
    try:
        info = pltpu.get_tpu_info()
        phys = getattr(info, "vmem_capacity_bytes", None)
        if phys:
            return min(96 * 1024 * 1024, (3 * int(phys)) // 4)
    except Exception:
        pass
    return 48 * 1024 * 1024


def _stack_complex_weight(w):
    """(2, nb, bs, bs) -> (nb, 2bs, 2bs) s.t. [r;i]^T_out = W_s @ [r;i]^T_in."""
    wr = jnp.swapaxes(w[0], -1, -2)            # w_r^T per block
    wi = jnp.swapaxes(w[1], -1, -2)            # w_i^T per block
    top = jnp.concatenate([wr, -wi], axis=-1)  # (nb, bs, 2bs)
    bot = jnp.concatenate([wi, wr], axis=-1)
    return jnp.concatenate([top, bot], axis=-2)  # (nb, 2bs, 2bs)


# ----------------------------------------------------------------------------
# Forward pass (module equivalent)
# ----------------------------------------------------------------------------
def adaptive_fourier_neural_operator(x, params, h, w, num_blocks,
                                     sparsity=0.01, tn_max=None):
    """Forward pass equivalent to AdaptiveFourierNeuralOperator.forward."""
    b, hw, d = x.shape
    assert hw == h * w and d % num_blocks == 0
    bs = d // num_blocks
    bs2 = 2 * bs
    bias = x

    # Channels-first so the FFT axes are trailing and the spectrum reshapes
    # straight into the kernel layout (tokens on the lane axis).
    xt = x.reshape(b, h, w, d).transpose(0, 3, 1, 2).astype(jnp.float32)
    xf = jnp.fft.rfft2(xt, axes=(2, 3), norm="ortho")       # (b, d, H, Wf) c64
    H, Wf = xf.shape[2], xf.shape[3]
    s = H * Wf

    # (b, nb, 2bs, S): real rows stacked over imag rows per block, bf16 in HBM.
    xr = jnp.real(xf).reshape(b, num_blocks, bs, s)
    xi = jnp.imag(xf).reshape(b, num_blocks, bs, s)
    xs = jnp.concatenate([xr, xi], axis=2).astype(jnp.bfloat16)

    # --- token tiling: pad only to a multiple of 128, balance the tiles ------
    s128 = _round_up(s, 128)
    if tn_max is None:
        if bs <= 16:
            tn_max = 8192
        elif bs <= 32:
            tn_max = 4096
        else:
            tn_max = 2048
    tn_max = max(128, min(tn_max, s128))
    n_tiles = pl.cdiv(s128, tn_max)
    tn = _round_up(pl.cdiv(s128, n_tiles), 128)
    s_pad = n_tiles * tn
    if s_pad != s:
        xs = jnp.pad(xs, ((0, 0), (0, 0), (0, 0), (0, s_pad - s)))

    # --- nb-blocking: amortize per-step overhead when bs/TN tiles are small --
    vmem_budget = _vmem_budget_bytes()
    usable = int(vmem_budget * 0.6)   # headroom for Mosaic internal scratch

    def _footprint(nbt):
        tile_io = nbt * bs2 * tn * 2                    # one bf16 x/out tile
        wts = nbt * (2 * bs2 * bs2 * 2 + 2 * bs2 * 4)   # bf16 w + f32 b
        scratch = 4 * bs2 * tn * 4                      # f32 layer intermediates
        return 4 * tile_io + 2 * wts + scratch          # 2x-buffered in + out

    nb_tile = 1
    for cand in range(1, num_blocks + 1):
        if num_blocks % cand:
            continue
        if _footprint(cand) > usable:
            break
        nb_tile = cand
        if cand * bs2 * tn * 2 >= (1 << 20):            # ~1 MiB x tile is plenty
            break

    # --- stacked complex weights (one MXU matmul per layer) ------------------
    w1s = _stack_complex_weight(params["w1"]).astype(jnp.bfloat16)
    w2s = _stack_complex_weight(params["w2"]).astype(jnp.bfloat16)
    b1s = jnp.concatenate([params["b1"][0], params["b1"][1]],
                          axis=-1).reshape(num_blocks, bs2, 1).astype(jnp.float32)
    b2s = jnp.concatenate([params["b2"][0], params["b2"][1]],
                          axis=-1).reshape(num_blocks, bs2, 1).astype(jnp.float32)

    out = afno_spectral_mix(xs, w1s, w2s, b1s, b2s, sparsity, nb_tile, tn,
                            vmem_budget)

    out = out[..., :s].astype(jnp.float32)               # (b, nb, 2bs, s)
    xc = (out[:, :, :bs, :] + 1j * out[:, :, bs:, :]).reshape(b, d, H, Wf)
    y = jnp.fft.irfft2(xc, s=(h, w), axes=(2, 3), norm="ortho")  # (b, d, h, w)
    y = y.transpose(0, 2, 3, 1).reshape(b, hw, d)
    return y + bias


# ----------------------------------------------------------------------------
# Pure-JAX reference (direct transcription of the PyTorch module, f32)
# ----------------------------------------------------------------------------
def reference_forward(x, params, h, w, num_blocks, sparsity=0.01):
    b, hw, d = x.shape
    bs = d // num_blocks
    bias = x
    xf = jnp.fft.rfft2(x.reshape(b, h, w, d).astype(jnp.float32),
                       axes=(1, 2), norm="ortho")
    xf = xf.reshape(b, xf.shape[1], xf.shape[2], num_blocks, bs)
    mul = lambda inp, wt: jnp.einsum("...lm,lmn->...ln", inp, wt)
    w1, w2, b1, b2 = params["w1"], params["w2"], params["b1"], params["b2"]
    xr, xi = jnp.real(xf), jnp.imag(xf)
    r1 = jax.nn.relu(mul(xr, w1[0]) - mul(xi, w1[1]) + b1[0])
    i1 = jax.nn.relu(mul(xr, w1[1]) + mul(xi, w1[0]) + b1[1])
    r2 = jax.nn.relu(mul(r1, w2[0]) - mul(i1, w2[1]) + b2[0])
    i2 = jax.nn.relu(mul(r1, w2[1]) + mul(i1, w2[0]) + b2[1])
    ss = lambda v: jnp.where(v > sparsity, v - sparsity,
                             jnp.where(v < -sparsity, v + sparsity, 0.0))
    xc = (ss(r2) + 1j * ss(i2)).reshape(b, xf.shape[1], xf.shape[2], d)
    y = jnp.fft.irfft2(xc, s=(h, w), axes=(1, 2), norm="ortho")
    return y.reshape(b, hw, d) + bias


if __name__ == "__main__":
    # Small shapes consistent with the module: embed_dim=32, h=w=8, num_blocks=4
    batch, h, w, embed_dim, num_blocks = 2, 8, 8, 32, 4
    sparsity = 0.01
    # Larger than the module's 0.02 init scale so softshrink keeps plenty of
    # non-zero values and the test meaningfully exercises the bf16 path.
    scale = 0.1
    block_size = embed_dim // num_blocks

    key = jax.random.PRNGKey(0)
    k1, k2, k3, k4, k5 = jax.random.split(key, 5)
    params = {
        "w1": scale * jax.random.normal(
            k1, (2, num_blocks, block_size, block_size), jnp.float32),
        "w2": scale * jax.random.normal(
            k2, (2, num_blocks, block_size, block_size), jnp.float32),
        "b1": scale * jax.random.normal(
            k3, (2, num_blocks, block_size), jnp.float32),
        "b2": scale * jax.random.normal(
            k4, (2, num_blocks, block_size), jnp.float32),
    }
    x = jax.random.normal(k5, (batch, h * w, embed_dim), jnp.float32)

    out = adaptive_fourier_neural_operator(x, params, h, w, num_blocks,
                                           sparsity)
    out = jax.block_until_ready(out)

    ref = reference_forward(x, params, h, w, num_blocks, sparsity)
    assert out.shape == (batch, h * w, embed_dim)
    # bf16 spectrum storage in the kernel -> loosened tolerance vs f32 reference.
    assert jnp.allclose(out, ref, atol=5e-2, rtol=5e-2), "mismatch vs reference"

    print("KERNEL_OK")
</pallas_src>

<mosaic_0001>
module attributes {stable_mosaic.version = 11 : i64} {
  func.func @_afno_block_kernel(%arg0: i32, %arg1: i32, %arg2: i32, %arg3: memref<1x4x16x128xbf16, #tpu.memory_space<vmem>>, %arg4: memref<4x16x16xbf16, #tpu.memory_space<vmem>>, %arg5: memref<4x16x16xbf16, #tpu.memory_space<vmem>>, %arg6: memref<4x16x1xf32, #tpu.memory_space<vmem>>, %arg7: memref<4x16x1xf32, #tpu.memory_space<vmem>>, %arg8: memref<1x4x16x128xbf16, #tpu.memory_space<vmem>>) attributes {dimension_semantics = [#tpu.dimension_semantics<parallel>, #tpu.dimension_semantics<parallel>, #tpu.dimension_semantics<parallel>], iteration_bounds = array<i64: 1, 2, 1>, scalar_prefetch = 0 : i64, scratch_operands = 0 : i64, tpu.core_type = #tpu.core_type<tc>, window_params = [{transform_indices = @transform_0, window_bounds = array<i64: 1, 4, 16, 128>}, {transform_indices = @transform_1, window_bounds = array<i64: 4, 16, 16>}, {transform_indices = @transform_2, window_bounds = array<i64: 4, 16, 16>}, {transform_indices = @transform_3, window_bounds = array<i64: 4, 16, 1>}, {transform_indices = @transform_4, window_bounds = array<i64: 4, 16, 1>}, {transform_indices = @transform_5, window_bounds = array<i64: 1, 4, 16, 128>}]} {
    %cst = arith.constant 0.00999999977 : f32
    %c0_i32 = arith.constant 0 : i32
    %c4_i32 = arith.constant 4 : i32
    %0 = arith.addi %c0_i32, %c4_i32 : i32
    %c1_i32 = arith.constant 1 : i32
    scf.for %arg9 = %c0_i32 to %0 step %c1_i32  : i32 {
      %c0 = arith.constant 0 : index
      %1 = arith.index_cast %arg9 : i32 to index
      %c0_1 = arith.constant 0 : index
      %c0_2 = arith.constant 0 : index
      %2 = vector.load %arg3[%c0, %1, %c0_1, %c0_2] : memref<1x4x16x128xbf16, #tpu.memory_space<vmem>>, vector<1x1x16x128xbf16>
      %3 = vector.shape_cast %2 : vector<1x1x16x128xbf16> to vector<16x128xbf16>
      %4 = arith.index_cast %arg9 : i32 to index
      %c0_3 = arith.constant 0 : index
      %c0_4 = arith.constant 0 : index
      %5 = vector.load %arg4[%4, %c0_3, %c0_4] : memref<4x16x16xbf16, #tpu.memory_space<vmem>>, vector<1x16x16xbf16>
      %6 = vector.shape_cast %5 : vector<1x16x16xbf16> to vector<16x16xbf16>
      %cst_5 = arith.constant dense<0.000000e+00> : vector<16x128xf32>
      %7 = tpu.matmul %6, %3, %cst_5 {dimension_numbers = #tpu.dot_dimension_numbers<[1], [0], [0], [1], [0, 0, 1, 1], [], []>} : vector<16x16xbf16>, vector<16x128xbf16>, vector<16x128xf32> -> vector<16x128xf32>
      %8 = arith.index_cast %arg9 : i32 to index
      %c0_6 = arith.constant 0 : index
      %c0_7 = arith.constant 0 : index
      %9 = vector.load %arg6[%8, %c0_6, %c0_7] : memref<4x16x1xf32, #tpu.memory_space<vmem>>, vector<1x16x1xf32>
      %10 = vector.shape_cast %9 : vector<1x16x1xf32> to vector<16x1xf32>
      %11 = vector.broadcast %10 : vector<16x1xf32> to vector<16x128xf32>
      %12 = arith.addf %7, %11 : vector<16x128xf32>
      %cst_8 = arith.constant 0.000000e+00 : f32
      %13 = vector.broadcast %cst_8 : f32 to vector<16x128xf32>
      %14 = arith.maximumf %12, %13 : vector<16x128xf32>
      %15 = arith.index_cast %arg9 : i32 to index
      %c0_9 = arith.constant 0 : index
      %c0_10 = arith.constant 0 : index
      %16 = vector.load %arg5[%15, %c0_9, %c0_10] : memref<4x16x16xbf16, #tpu.memory_space<vmem>>, vector<1x16x16xbf16>
      %17 = vector.shape_cast %16 : vector<1x16x16xbf16> to vector<16x16xbf16>
      %18 = arith.truncf %14 : vector<16x128xf32> to vector<16x128xbf16>
      %cst_11 = arith.constant dense<0.000000e+00> : vector<16x128xf32>
      %19 = tpu.matmul %17, %18, %cst_11 {dimension_numbers = #tpu.dot_dimension_numbers<[1], [0], [0], [1], [0, 0, 1, 1], [], []>} : vector<16x16xbf16>, vector<16x128xbf16>, vector<16x128xf32> -> vector<16x128xf32>
      %20 = arith.index_cast %arg9 : i32 to index
      %c0_12 = arith.constant 0 : index
      %c0_13 = arith.constant 0 : index
      %21 = vector.load %arg7[%20, %c0_12, %c0_13] : memref<4x16x1xf32, #tpu.memory_space<vmem>>, vector<1x16x1xf32>
      %22 = vector.shape_cast %21 : vector<1x16x1xf32> to vector<16x1xf32>
      %23 = vector.broadcast %22 : vector<16x1xf32> to vector<16x128xf32>
      %24 = arith.addf %19, %23 : vector<16x128xf32>
      %25 = vector.broadcast %cst : f32 to vector<16x128xf32>
      %26 = arith.subf %24, %25 : vector<16x128xf32>
      %cst_14 = arith.constant 0.000000e+00 : f32
      %27 = vector.broadcast %cst_14 : f32 to vector<16x128xf32>
      %28 = arith.maximumf %26, %27 : vector<16x128xf32>
      %29 = arith.truncf %28 : vector<16x128xf32> to vector<16x128xbf16>
      %c0_15 = arith.constant 0 : index
      %30 = arith.index_cast %arg9 : i32 to index
      %c0_16 = arith.constant 0 : index
      %c0_17 = arith.constant 0 : index
      %31 = vector.load %arg8[%c0_15, %30, %c0_16, %c0_17] : memref<1x4x16x128xbf16, #tpu.memory_space<vmem>>, vector<1x1x16x128xbf16>
      %32 = vector.shape_cast %31 : vector<1x1x16x128xbf16> to vector<16x128xbf16>
      %33 = vector.shape_cast %29 : vector<16x128xbf16> to vector<1x1x16x128xbf16>
      tpu.vector_store %arg8[%c0_15, %30, %c0_16, %c0_17], %33 {strides = array<i32>} : memref<1x4x16x128xbf16, #tpu.memory_space<vmem>>, vector<1x1x16x128xbf16>,
    }
    %c4_i32_0 = arith.constant 4 : i32
    return
  }
  func.func @transform_0(%arg0: i32, %arg1: i32, %arg2: i32) -> (i32, i32, i32, i32) {
    %c0_i32 = arith.constant 0 : i32
    %c0_i32_0 = arith.constant 0 : i32
    return %arg1, %arg0, %c0_i32, %arg2 : i32, i32, i32, i32
  }
  func.func @transform_1(%arg0: i32, %arg1: i32, %arg2: i32) -> (i32, i32, i32) {
    %c0_i32 = arith.constant 0 : i32
    %c0_i32_0 = arith.constant 0 : i32
    %c0_i32_1 = arith.constant 0 : i32
    return %arg0, %c0_i32, %c0_i32_0 : i32, i32, i32
  }
  func.func @transform_2(%arg0: i32, %arg1: i32, %arg2: i32) -> (i32, i32, i32) {
    %c0_i32 = arith.constant 0 : i32
    %c0_i32_0 = arith.constant 0 : i32
    %c0_i32_1 = arith.constant 0 : i32
    return %arg0, %c0_i32, %c0_i32_0 : i32, i32, i32
  }
  func.func @transform_3(%arg0: i32, %arg1: i32, %arg2: i32) -> (i32, i32, i32) {
    %c0_i32 = arith.constant 0 : i32
    %c0_i32_0 = arith.constant 0 : i32
    %c0_i32_1 = arith.constant 0 : i32
    return %arg0, %c0_i32, %c0_i32_0 : i32, i32, i32
  }
  func.func @transform_4(%arg0: i32, %arg1: i32, %arg2: i32) -> (i32, i32, i32) {
    %c0_i32 = arith.constant 0 : i32
    %c0_i32_0 = arith.constant 0 : i32
    %c0_i32_1 = arith.constant 0 : i32
    return %arg0, %c0_i32, %c0_i32_0 : i32, i32, i32
  }
  func.func @transform_5(%arg0: i32, %arg1: i32, %arg2: i32) -> (i32, i32, i32, i32) {
    %c0_i32 = arith.constant 0 : i32
    %c0_i32_0 = arith.constant 0 : i32
    return %arg1, %arg0, %c0_i32, %arg2 : i32, i32, i32, i32
  }
}

</mosaic_0001>

<bundles_post_ra>
// kernel: tpu_custom_call.1
= control target key start
LH: loop header
LB: loop body
LE: loop exit
PB: predicated region body
PF: predicated region fallthrough
CT: control target
= control target key end

     0   :  { %10 = vsyncpa [#allocation3], 0  ;;  %s1057_s0 = inlined_call_operand.vmem [shape: bf16[2,4,16,128], index: 0, kind: input, shape index: {}]   ;;  %s1058_s1 = inlined_call_operand.vmem [shape: bf16[4,16,16], index: 1, kind: input, shape index: {}]   ;;  %s1059_s2 = inlined_call_operand.vmem [shape: bf16[4,16,16], index: 2, kind: input, shape index: {}]   ;;  %s1060_s3 = inlined_call_operand.vmem [shape: f32[4,16,1], index: 3, kind: input, shape index: {}]   ;;  %s1061_s4 = inlined_call_operand.vmem [shape: f32[4,16,1], index: 4, kind: input, shape index: {}]   ;;  %s1062_s5 = inlined_call_operand.hbm [shape: bf16[2,4,16,128], index: 5, kind: output, shape index: {}]  }
   0x1   :  { %12 = vsyncpa [#allocation3 + $0x1], 0  ;;  %s916_s18 = smov 0   ;;  %s918_s19 = smov 0  }
   0x2   :  { %s920_s20 = smov 0   ;;  %s922_s21 = smov 0  }
   0x3   :  { %s924_s22 = smov 0   ;;  %s926_s23 = smov 0  }
   0x4 LB: > { %s674_s24 = sadd.s32 4294967295, %s877_s23   ;;  %s675_s25 = sadd.s32 4294967294, %s877_s23   ;;  %s877_s23 = sphi %s926_s23, %s18_s23   ;;  %s873_s22 = sphi %s924_s22, %s1071_s22   ;;  %s869_s21 = sphi %s922_s21, %s1070_s21   ;;  %s865_s20 = sphi %s920_s20, %s1069_s20   ;;  %s861_s19 = sphi %s918_s19, %s1068_s19   ;;  %s857_s18 = sphi %s916_s18, %s1067_s18  }
   0x5   : > { %s33_s26 = sadd.s32 1, %s873_s22  ;;  %s182_s27 = sadd.s32 1, %s865_s20 }
   0x6   : > { %p35_p0 = scmp.ge.s32.totalorder %s33_s26, 2  ;;  %p192_p1 = scmp.ne.s32.totalorder %s865_s20, %s861_s19 }
   0x7   : > { %p193_p2 = scmp.eq.s32.totalorder %s674_s24, 1  ;;  %p198_p3 = scmp.ne.s32.totalorder %s861_s19, %s857_s18 }
   0x8   : > { %s1073_s26 = smov (%p35_p0, %s33_s26), 0  ;;  %p199_p5 = scmp.eq.s32.totalorder %s675_s25, 1 }
   0x9   : > { %p956_p4 = por %p193_p2, %p192_p1  ;;  %s175_s29 = ssub.s32 %s873_s22, %s1073_s26 }
   0xa   : > { %p682_p6 = scmp.ge.s32.totalorder %s877_s23, 1  ;;  %p180_p7 = scmp.eq.s32.totalorder %s175_s29, 0 }
   0xb   : > { %p963_p8 = por %p199_p5, %p198_p3  ;;  %p274_p9 = scmp.lt.s32.totalorder %s877_s23, 3 }
   0xc   : > { %s969_s6 = scalar_select %p180_p7, %s865_s20, %s182_s27  }
   0xd   : > { %p275_p10 = pnand %p682_p6, %p274_p9 }
   0xe   : > { %s1063_s7 = sand.u32 (!%p275_p10), 1, %s861_s19   ;;  %p335_p11 = scmp.lt.s32.totalorder (!%p275_p10), %s869_s21, 1 }
   0xf   : > { %278 = sbr.rel (%p275_p10) target bundleno = 319 (0x13f), region = 40  ;;  %s975_s8 = sshll.u32 (!%p275_p10), %s1063_s7, 5 }
  0x10   : > { %s333_s14 = scalar_lea.vmem (!%p275_p10), [#allocation2], %s975_s8  ;;  %s984_s15 = smov (!%p275_p10), 0  }
  0x14   : > { %s336_s9 = scalar_select %p335_p11, %s869_s21, 1 }
  0x16   : > { %s713_s10 = sshll.u32 %s336_s9, 5 }
  0x17   : > { %s981_s13 = scalar_lea.vmem %s1057_s0, %s713_s10 }
  0x18 LB: >> { %v883_v0 = vmov 0   ;;  %s990_s16 = sshll.u32 %s881_s15, 3  ;;  %s689_s17 = sshll.u32 %s881_s15, 4  ;;  %vm418_vm0 = vcmask 130048   ;;  %s881_s15 = sphi %s984_s15, %s383_s15  }
  0x19   : >> { %793 = vset.pattern.permute.xlu0 %v883_v0  ;;  %794 = vset.pattern.permute.xlu1 %v883_v0  ;;  %s386_s24 = scalar_lea.vmem %s981_s13, %s990_s16  ;;  %s390_s29 = scalar_lea.vmem %s1058_s1, %s990_s16 }
  0x1a   : >> { %v715_v1 = vld [vmem:[%s386_s24] sm:$0xff]  ;;  %s394_s11 = scalar_lea.vmem %s1060_s3, %s689_s17  ;;  %s443_s25 = scalar_lea.vmem %s1061_s4, %s689_s17 }
  0x1b   : >> { %v717_v2 = vld [vmem:[%s390_s29] sm:$0xff]  ;;  %429 = vmatpush.bf16.msra.mxu0 %v715_v1  ;;  %v396_v4 = vld [vmem:[%s394_s11 + $0x8] sm:$0xff]  ;;  %s439_s29 = scalar_lea.vmem %s1059_s2, %s990_s16  ;;  %s485_s7 = scalar_lea.vmem %s333_s14, %s990_s16 [#allocation2] }
  0x1c   : >> { %v395_v3 = vld [vmem:[%s394_s11] sm:$0xff]  ;;  %v445_v6 = vld [vmem:[%s443_s25 + $0x8] sm:$0xff]  ;;  %s383_s15 = sadd.s32 1, %s881_s15  }
  0x1d   : >> { %399 = vperm.xlu0 %793, %v395_v3   ;;  %v444_v5 = vld [vmem:[%s443_s25] sm:$0xff]  ;;  %p380_p12 = scmp.ge.s32.totalorder %s383_s15, 4  }
  0x1e   : >> { %698 = vmatmul.msk.bf16.vlgmr.msra.gmra.mxu0 %vm418_vm0, %v717_v2  ;;  %448 = vperm.xlu1 %794, %v444_v5   ;;  %v719_v16 = vld [vmem:[%s439_s29] sm:$0xff]  ;;  %s721_s17 = sshll.u32 (%p380_p12), %s869_s21, 5  ;;  %s505_s12 = sshll.u32 (%p380_p12), %s333_s14, 4  ;;  %s506_s12 = int_to_ptr.vmem [resolvable:$true] %s505_s12 }
  0x1f   : > { %s504_s11 = scalar_lea.hbm (%p380_p12), %s1062_s5, %s721_s17  ;;  %s1066_s25 = sand.u32 (%p380_p12), 1, %s861_s19  }
  0x20   : > { %s507_s16 = sshll.u32 (%p380_p12), %s504_s11, 4  ;;  %s489_s24 = scalar_lea.sflag (%p380_p12), [#allocation3], %s1066_s25  ;;  %s508_s16 = int_to_ptr.hbm [resolvable:$true] %s507_s16 }
  0x21   : > { %s809_s27 = sshra.s32 (%p380_p12), %s508_s16, 4  ;;  %s815_s29 = scalar_lea.hbm (%p380_p12), %s1062_s5, 64  ;;  %s810_s27 = int_to_ptr.hbm [resolvable:$true] %s809_s27 }
  0x22   : > { %s811_s15 = scalar_lea.hbm (%p380_p12), %s810_s27, 32  ;;  %p816_p2 = scmp.lt.s32.totalorder (%p380_p12), %s810_s27, %s1062_s5 }
  0x23   : > { %p812_p13 = scmp.ne.s32.totalorder (%p380_p12), %s810_s27, %s811_s15  ;;  %p817_p3 = scmp.lt.s32.totalorder (%p380_p12), %s815_s29, %s811_s15 }
  0x25   : >> { %404 = vperm.xlu0 %793, %v396_v4   ;;  %p813_p0 = pnand (%p380_p12), %p812_p13, %p956_p4  ;;  %p818_p5 = por (%p380_p12), %p817_p3, %p816_p2 }
  0x26   : >> { %453 = vperm.xlu1 %794, %v445_v6  }
  0x27   : > { %p814_p1 = pneg (%p380_p12), %p813_p0 }
  0x29   : > { %p819_p6 = pnand (%p380_p12), %p818_p5, %p814_p1 }
  0x8f   : >> { %v400_v7 = vpop.permute.xlu0 %399 }
  0x90   : >> { %v449_v17 = vpop.permute.xlu1 %448 }
  0x97   : >> { %v405_v10 = vpop.permute.xlu0 %404 }
  0x98   : >> { %v454_v20 = vpop.permute.xlu1 %453 }
  0x9b   : >> { %v431_v8 = vpop.f32.mrf.mxu0 }
  0x9c   : >> { %v432_v9 = vadd.f32 %v431_v8, %v400_v7 }
  0x9e   : >> { %v436_v13 = vmax.f32 %v432_v9, 0.0 }
  0xa3   : >> { %v433_v11 = vpop.f32.mrf.mxu0 }
  0xa4   : >> { %v434_v12 = vadd.f32 %v433_v11, %v405_v10 }
  0xa6   : >> { %v437_v14 = vmax.f32 %v434_v12, 0.0 }
  0xa8   : >> { %v442_v15 = vpack.c.bf16 %v437_v14, %v436_v13 }
  0xaa   : >> { %471 = vmatpush.bf16.msra.mxu1 %v442_v15 }
  0xad   : >> { %704 = vmatmul.msk.bf16.vlgmr.msra.gmra.mxu1 %vm418_vm0, %v719_v16 }
 0x12a   : >> { %v473_v18 = vpop.f32.mrf.mxu1 }
 0x12b   : >> { %v474_v19 = vadd.f32 %v473_v18, %v449_v17 }
 0x12d   : >> { %v705_v22 = vadd.f32 -0.01, %v474_v19 }
 0x12f   : >> { %v480_v25 = vmax.f32 %v705_v22, 0.0 }
 0x132   : >> { %v475_v21 = vpop.f32.mrf.mxu1 }
 0x133   : >> { %v476_v23 = vadd.f32 %v475_v21, %v454_v20 }
 0x135   : >> { %v706_v24 = vadd.f32 -0.01, %v476_v23 }
 0x137   : >> { %v481_v26 = vmax.f32 %v706_v24, 0.0  ;;  %382 = sbr.rel (!%p380_p12) target bundleno = 24 (0x18), region = 100 }
 0x139   : >> { %v725_v27 = vpack.c.bf16 %v481_v26, %v480_v25 }
 0x13b   : >> { %726 = vst [vmem:[%s485_s7] sm:$0xff] %v725_v27  }
 0x13c   : > { %822 = shalt.err (!%p819_p6)
}
 0x13d   : > { %s884_s8 = smov 64   ;;  %s885_s14 = smov 4  }
 0x13e   : > { %727 = dma.vmem_to_hbm [thread:$0]  (%p956_p4), %s506_s12, 512, %s508_s16, %s489_s24, %s884_s8, %s884_s8, %s885_s14  }
 0x13f PF: > { %p733_p7 = scmp.ge.s32.totalorder %s877_s23, 2  ;;  %s522_s9 = sand.u32 1, %s857_s18  }
 0x140   : > { %s523_s10 = scalar_lea.sflag [#allocation3], %s522_s9 }
 0x141   : > { %p730_p9 = pnand %p733_p7, %p963_p8 }
 0x143   : > { %p731_p10 = pneg %p730_p9 }
 0x145   : > { %852 = dma.done.wait (%p731_p10), %s523_s10, 512  }
 0x146   : > { %854 = vsyncadd (%p731_p10), %s523_s10, 4294966784  ;;  %s18_s23 = sadd.s32 1, %s877_s23   ;;  %s1067_s18 = smov %s861_s19 }
 0x147   : > { %p15_p11 = scmp.ge.s32.totalorder %s18_s23, 4   ;;  %s1068_s19 = smov %s865_s20 }
 0x148   : > { %s1069_s20 = smov %s969_s6  ;;  %s1070_s21 = smov %s873_s22 }
 0x149   : > { %s1071_s22 = smov %s1073_s26  ;;  %17 = sbr.rel (!%p15_p11) target bundleno = 4 (0x4), region = 111 }
 0x14e   :  { %529 = vsyncpa [#allocation3], 1 }
 0x14f   :  { %531 = vsyncpa [#allocation3 + $0x1], 1 }

</bundles_post_ra>
